<compile_context>
chip_gen: v7x
topology: tpu7x:2x2x1
jax: 0.10.0
libtpu: 0.0.40
codegen_flags: <defaults>
</compile_context>

<pallas_src>
import jax
import jax.numpy as jnp
import numpy as np
from jax import lax
from jax.experimental import pallas as pl
from jax.experimental.pallas import tpu as pltpu


def _col_tile(n, budget_bytes=8 << 20):
    """Lane tile width.  Largest of {512, 256, 128} dividing n whose f32
    (N, TN) scratch slab stays under `budget_bytes` (keeps v7x's 64 MiB VMEM
    happy while v5e/v6e get the big tiles); full extent if n % 128 != 0."""
    if n % 128 != 0:
        return n
    for t in (512, 256, 128):
        if n % t == 0 and n * t * 4 <= budget_bytes:
            return t
    return 128


# ---------------------------------------------------------------------------
# Kernel 1: fused partial-distance + top-k.
#   score[m, n] = 2 * x_m.x_n - |x_m|^2   (the per-query |x_n|^2 term is constant
#   along the candidate axis m and cannot change the top-k -> dropped).
#   Candidates m live on sublanes, queries n on lanes; k rounds of
#   (max over m, argmin-index tie-break, mask) write nn_idx rows directly.
# ---------------------------------------------------------------------------
def _pdist_topk_kernel(xq_ref, xall_ref, sq_ref, nn_ref, dist_ref):
    xq = xq_ref[0]                                            # (C, TN) query slab
    xall = xall_ref[0]                                        # (N, C) all candidates
    sq = sq_ref[0]                                            # (N, 1) |x_m|^2
    dn = (((1,), (0,)), ((), ()))                             # contract over channels
    dist_ref[...] = 2.0 * lax.dot_general(
        xall, xq, dn, preferred_element_type=jnp.float32) - sq       # (N, TN)

    n_pts, tn = dist_ref.shape
    k = nn_ref.shape[1]
    cand = lax.broadcasted_iota(jnp.int32, (n_pts, tn), 0).astype(jnp.float32)

    # k is tiny (9); static unroll, temporaries bounded by the scratch ref.
    for kk in range(k):
        d = dist_ref[...]
        vmax = jnp.max(d, axis=0, keepdims=True)                      # (1, TN)
        sel = jnp.min(jnp.where(d == vmax, cand, float(n_pts)),
                      axis=0, keepdims=True)                          # (1, TN) f32
        nn_ref[0, kk:kk + 1, :] = sel.astype(jnp.int32)
        dist_ref[...] = jnp.where(cand == sel, -jnp.inf, d)           # mask winner


# ---------------------------------------------------------------------------
# Kernel 2: EdgeConv gather + folded 1x1 conv, running max/min over k,
#           f32 BN partial statistics.
#   pre_kk = wdx[:, n] + wjx[:, idx[kk, n]]      (wdx = (w_i-w_j)@x, wjx = w_j@x)
# ---------------------------------------------------------------------------
def _edgeconv_kernel(wjx_ref, wdx_ref, idx_ref, mx_ref, mn_ref, st_ref):
    n_pts = wjx_ref.shape[2]
    c_out, tn = wdx_ref.shape[1], wdx_ref.shape[2]
    k = idx_ref.shape[1]

    wjx = wjx_ref[0]                                          # (C_out, N) bf16
    u = wdx_ref[0]                                            # (C_out, TN) f32
    idx_all = idx_ref[0]                                      # (k, TN) int32
    iota = lax.broadcasted_iota(jnp.int32, (n_pts, tn), 0)
    row_iota = lax.broadcasted_iota(jnp.int32, (k, tn), 0)

    def body(kk, carry):
        mx, mn, s, q = carry
        # select row kk of idx_all without dynamic sublane slicing
        nbr = jnp.sum(jnp.where(row_iota == kk, idx_all, 0),
                      axis=0, keepdims=True)                  # (1, TN)
        g = (iota == nbr).astype(jnp.bfloat16)                # (N, TN) one-hot
        slab = u + jnp.dot(wjx, g, preferred_element_type=jnp.float32)  # (C_out, TN)
        mx = jnp.maximum(mx, slab)
        mn = jnp.minimum(mn, slab)
        s = s + jnp.sum(slab, axis=1, keepdims=True)
        q = q + jnp.sum(slab * slab, axis=1, keepdims=True)
        return mx, mn, s, q

    init = (jnp.full((c_out, tn), -jnp.inf, jnp.float32),
            jnp.full((c_out, tn), jnp.inf, jnp.float32),
            jnp.zeros((c_out, 1), jnp.float32),
            jnp.zeros((c_out, 1), jnp.float32))
    mx, mn, s, q = lax.fori_loop(0, k, body, init)            # bounds live ranges

    mx_ref[0] = mx
    mn_ref[0] = mn
    st_ref[0, 0, :, 0:1] = s                                  # f32 BN partial sums
    st_ref[0, 0, :, 1:2] = q


# ---------------------------------------------------------------------------
# Kernel 3: folded BatchNorm scale/shift + ReLU + max over neighbors.
#   relu(a*p + b) is monotone in p with sign(a)  =>  max_k uses mx when a>=0,
#   mn when a<0.  Exact.
# ---------------------------------------------------------------------------
def _bn_relu_max_kernel(mx_ref, mn_ref, scale_ref, shift_ref, out_ref):
    scale = scale_ref[...]                                    # (C_out, 1)
    shift = shift_ref[...]
    sel = jnp.where(scale >= 0.0, mx_ref[0], mn_ref[0])       # (C_out, TN)
    out_ref[0] = jnp.maximum(sel * scale + shift, 0.0)


# ---------------------------------------------------------------------------
# Wrapper = PlainDynBlock2d.forward (edge_index=None => dense dilated knn graph)
# ---------------------------------------------------------------------------
def plain_dyn_block2d(x, w, gamma, beta, *, k=9, eps=1e-5):
    """x: (B, C, N, 1) float32 (NCHW). Returns ((B, C_out, N), nn_idx (B, N, k))."""
    B, C, N, W1 = x.shape
    assert W1 == 1
    C_out = w.shape[0]
    x_bcn = x[..., 0]                                         # (B, C, N)
    x_nc = jnp.transpose(x_bcn, (0, 2, 1))                    # (B, N, C) matmul lhs
    sq = jnp.sum(x_nc * x_nc, axis=2, keepdims=True)          # (B, N, 1)

    TN = _col_tile(N)
    NT = N // TN
    par2 = pltpu.CompilerParams(dimension_semantics=("parallel", "parallel"))

    # ---- DenseDilatedKnnGraph (knn='matrix', dilation=1, stochastic=False) ----
    nn_idx_kn = pl.pallas_call(
        _pdist_topk_kernel,
        grid=(B, NT),
        in_specs=[
            pl.BlockSpec((1, C, TN), lambda b, j: (b, 0, j)),     # query column slab
            pl.BlockSpec((1, N, C), lambda b, j: (b, 0, 0)),      # all candidates
            pl.BlockSpec((1, N, 1), lambda b, j: (b, 0, 0)),      # |x_m|^2
        ],
        out_specs=pl.BlockSpec((1, k, TN), lambda b, j: (b, 0, j)),
        out_shape=jax.ShapeDtypeStruct((B, k, N), jnp.int32),     # (B, k, N) layout
        scratch_shapes=[pltpu.VMEM((N, TN), jnp.float32)],        # score slab, VMEM only
        compiler_params=par2,
    )(x_bcn, x_nc, sq)

    # fold the 1x1 conv weights into the gather source / center term (tiny matmuls)
    w_i = w[:, :C]                                            # applies to x_i
    w_j = w[:, C:]                                            # applies to (x_j - x_i)
    wdx = jnp.einsum("oc,bcn->bon", w_i - w_j, x_bcn)                       # f32
    wjx = jnp.einsum("oc,bcn->bon", w_j, x_bcn).astype(jnp.bfloat16)        # bf16

    # ---- EdgeConv: running max/min over k + BN partial sums (no full `pre`) ----
    mx, mn, stats = pl.pallas_call(
        _edgeconv_kernel,
        grid=(B, NT),
        in_specs=[
            pl.BlockSpec((1, C_out, N), lambda b, j: (b, 0, 0)),   # wjx gather source
            pl.BlockSpec((1, C_out, TN), lambda b, j: (b, 0, j)),  # wdx center slab
            pl.BlockSpec((1, k, TN), lambda b, j: (b, 0, j)),      # neighbor indices
        ],
        out_specs=(
            pl.BlockSpec((1, C_out, TN), lambda b, j: (b, 0, j)),
            pl.BlockSpec((1, C_out, TN), lambda b, j: (b, 0, j)),
            pl.BlockSpec((1, 1, C_out, 2), lambda b, j: (b, j, 0, 0)),
        ),
        out_shape=(
            jax.ShapeDtypeStruct((B, C_out, N), jnp.float32),      # max over k
            jax.ShapeDtypeStruct((B, C_out, N), jnp.float32),      # min over k
            jax.ShapeDtypeStruct((B, NT, C_out, 2), jnp.float32),  # (sum, sum^2)
        ),
        compiler_params=par2,
    )(wjx, wdx, nn_idx_kn)

    # BatchNorm2d training-mode statistics per out-channel over (B, N, k).
    cnt = jnp.float32(B * k * N)
    tot = jnp.sum(stats, axis=(0, 1))                         # (C_out, 2)
    mean = tot[:, 0] / cnt
    var = jnp.maximum(tot[:, 1] / cnt - mean * mean, 0.0)     # biased var
    inv_std = gamma / jnp.sqrt(var + eps)
    scale = inv_std.reshape(C_out, 1).astype(jnp.float32)
    shift = (beta - mean * inv_std).reshape(C_out, 1).astype(jnp.float32)

    # ---- BN + ReLU + max over neighbors (sign-aware max/min selection) ----
    out = pl.pallas_call(
        _bn_relu_max_kernel,
        grid=(B, NT),
        in_specs=[
            pl.BlockSpec((1, C_out, TN), lambda b, j: (b, 0, j)),
            pl.BlockSpec((1, C_out, TN), lambda b, j: (b, 0, j)),
            pl.BlockSpec((C_out, 1), lambda b, j: (0, 0)),
            pl.BlockSpec((C_out, 1), lambda b, j: (0, 0)),
        ],
        out_specs=pl.BlockSpec((1, C_out, TN), lambda b, j: (b, 0, j)),
        out_shape=jax.ShapeDtypeStruct((B, C_out, N), jnp.float32),
        compiler_params=par2,
    )(mx, mn, scale, shift)

    nn_idx = jnp.transpose(nn_idx_kn, (0, 2, 1))              # (B, N, k), tiny
    return out, nn_idx


# ---------------------------------------------------------------------------
# Pure-JAX f32 reference (consumes the same nn_idx => checks conv/BN/max math)
# ---------------------------------------------------------------------------
def reference_forward(x_bcn, nn_idx, w, gamma, beta, eps=1e-5):
    B, C, N = x_bcn.shape
    k = nn_idx.shape[-1]
    x_j = jax.vmap(lambda xb, ib: xb[:, ib])(x_bcn, nn_idx)           # (B, C, N, k)
    x_i = jnp.broadcast_to(x_bcn[:, :, :, None], (B, C, N, k))
    edge = jnp.concatenate([x_i, x_j - x_i], axis=1)                  # (B, 2C, N, k)
    pre = jnp.einsum("oc,bcnk->bonk", w, edge)
    mean = jnp.mean(pre, axis=(0, 2, 3))
    var = jnp.mean((pre - mean[None, :, None, None]) ** 2, axis=(0, 2, 3))
    y = (pre - mean[None, :, None, None]) / jnp.sqrt(var[None, :, None, None] + eps)
    y = y * gamma[None, :, None, None] + beta[None, :, None, None]
    y = jnp.maximum(y, 0.0)
    return jnp.max(y, axis=-1)                                        # (B, C_out, N)


if __name__ == "__main__":
    # PlainDynBlock2d keeps the channel count: out_channels == in_channels.
    B, C, N, k = 2, 8, 16, 9
    C_out = C
    key = jax.random.PRNGKey(0)
    kx, kw, kg, kb = jax.random.split(key, 4)

    x = jax.random.normal(kx, (B, C, N, 1), dtype=jnp.float32)            # NCHW, W=1
    w = 0.1 * jax.random.normal(kw, (C_out, 2 * C), dtype=jnp.float32)    # Conv2d 1x1, no bias
    gamma = 1.0 + 0.1 * jax.random.normal(kg, (C_out,), dtype=jnp.float32)
    # flip half the BN weights negative to exercise the min-over-k branch
    gamma = gamma * jnp.where(jnp.arange(C_out) % 2 == 0, 1.0, -1.0)
    beta = 0.1 * jax.random.normal(kb, (C_out,), dtype=jnp.float32)

    out, nn_idx = plain_dyn_block2d(x, w, gamma, beta, k=k)
    out = jax.block_until_ready(out)
    assert out.shape == (B, C_out, N)

    # Independent check of the fused in-kernel top-k against lax.top_k.
    x_bcn = x[..., 0]
    inner = jnp.einsum("bcn,bcm->bnm", x_bcn, x_bcn)
    sqm = jnp.sum(x_bcn * x_bcn, axis=1)                       # (B, N) |x_m|^2
    scores = 2.0 * inner - sqm[:, None, :]
    _, ref_idx = lax.top_k(scores, k)
    np.testing.assert_array_equal(np.sort(np.asarray(nn_idx), axis=-1),
                                  np.sort(np.asarray(ref_idx), axis=-1))

    # Conv/BN/ReLU/max math vs an all-f32 reference (bf16 only on the w_j@x term).
    ref = reference_forward(x_bcn, nn_idx, w, gamma, beta)
    np.testing.assert_allclose(np.asarray(out), np.asarray(ref), rtol=2e-2, atol=2e-2)
    print("KERNEL_OK")
</pallas_src>

<mosaic_0001>
module attributes {stable_mosaic.version = 11 : i64} {
  func.func @_pdist_topk_kernel(%arg0: i32, %arg1: i32, %arg2: memref<1x8x16xf32, #tpu.memory_space<vmem>>, %arg3: memref<1x16x8xf32, #tpu.memory_space<vmem>>, %arg4: memref<1x16x1xf32, #tpu.memory_space<vmem>>, %arg5: memref<1x9x16xi32, #tpu.memory_space<vmem>>, %arg6: memref<16x16xf32, #tpu.memory_space<vmem>>) attributes {dimension_semantics = [#tpu.dimension_semantics<parallel>, #tpu.dimension_semantics<parallel>], iteration_bounds = array<i64: 2, 1>, scalar_prefetch = 0 : i64, scratch_operands = 1 : i64, tpu.core_type = #tpu.core_type<tc>, window_params = [{transform_indices = @transform_0, window_bounds = array<i64: 1, 8, 16>}, {transform_indices = @transform_1, window_bounds = array<i64: 1, 16, 8>}, {transform_indices = @transform_2, window_bounds = array<i64: 1, 16, 1>}, {transform_indices = @transform_3, window_bounds = array<i64: 1, 9, 16>}]} {
    %c0 = arith.constant 0 : index
    %c0_0 = arith.constant 0 : index
    %c0_1 = arith.constant 0 : index
    %0 = vector.load %arg2[%c0, %c0_0, %c0_1] : memref<1x8x16xf32, #tpu.memory_space<vmem>>, vector<1x8x16xf32>
    %1 = vector.shape_cast %0 : vector<1x8x16xf32> to vector<8x16xf32>
    %c0_2 = arith.constant 0 : index
    %c0_3 = arith.constant 0 : index
    %c0_4 = arith.constant 0 : index
    %2 = vector.load %arg3[%c0_2, %c0_3, %c0_4] : memref<1x16x8xf32, #tpu.memory_space<vmem>>, vector<1x16x8xf32>
    %3 = vector.shape_cast %2 : vector<1x16x8xf32> to vector<16x8xf32>
    %c0_5 = arith.constant 0 : index
    %c0_6 = arith.constant 0 : index
    %c0_7 = arith.constant 0 : index
    %4 = vector.load %arg4[%c0_5, %c0_6, %c0_7] : memref<1x16x1xf32, #tpu.memory_space<vmem>>, vector<1x16x1xf32>
    %5 = vector.shape_cast %4 : vector<1x16x1xf32> to vector<16x1xf32>
    %cst = arith.constant dense<0.000000e+00> : vector<16x16xf32>
    %6 = tpu.matmul %3, %1, %cst {dimension_numbers = #tpu.dot_dimension_numbers<[1], [0], [0], [1], [0, 0, 1, 1], [], []>} : vector<16x8xf32>, vector<8x16xf32>, vector<16x16xf32> -> vector<16x16xf32>
    %cst_8 = arith.constant 2.000000e+00 : f32
    %7 = vector.broadcast %cst_8 : f32 to vector<16x16xf32>
    %8 = arith.mulf %7, %6 : vector<16x16xf32>
    %9 = vector.broadcast %5 : vector<16x1xf32> to vector<16x16xf32>
    %10 = arith.subf %8, %9 : vector<16x16xf32>
    %c0_9 = arith.constant 0 : index
    %c0_10 = arith.constant 0 : index
    %11 = vector.load %arg6[%c0_9, %c0_10] : memref<16x16xf32, #tpu.memory_space<vmem>>, vector<16x16xf32>
    tpu.vector_store %arg6[%c0_9, %c0_10], %10 {strides = array<i32>} : memref<16x16xf32, #tpu.memory_space<vmem>>, vector<16x16xf32>,
    %12 = tpu.iota {dimensions = array<i32: 0>} : vector<16x16xi32>
    %13 = arith.sitofp %12 : vector<16x16xi32> to vector<16x16xf32>
    %c0_11 = arith.constant 0 : index
    %c0_12 = arith.constant 0 : index
    %14 = vector.load %arg6[%c0_11, %c0_12] : memref<16x16xf32, #tpu.memory_space<vmem>>, vector<16x16xf32>
    %cst_13 = arith.constant dense<0xFF800000> : vector<16xf32>
    %15 = vector.multi_reduction <maximumf>, %14, %cst_13 [0] : vector<16x16xf32> to vector<16xf32>
    %16 = vector.shape_cast %15 : vector<16xf32> to vector<1x16xf32>
    %17 = vector.broadcast %16 : vector<1x16xf32> to vector<16x16xf32>
    %18 = arith.cmpf oeq, %14, %17 : vector<16x16xf32>
    %cst_14 = arith.constant 1.600000e+01 : f32
    %19 = vector.broadcast %cst_14 : f32 to vector<16x16xf32>
    %20 = arith.select %18, %13, %19 : vector<16x16xi1>, vector<16x16xf32>
    %cst_15 = arith.constant dense<0x7F800000> : vector<16xf32>
    %21 = vector.multi_reduction <minimumf>, %20, %cst_15 [0] : vector<16x16xf32> to vector<16xf32>
    %22 = vector.shape_cast %21 : vector<16xf32> to vector<1x16xf32>
    %23 = arith.fptosi %22 : vector<1x16xf32> to vector<1x16xi32>
    %c0_16 = arith.constant 0 : index
    %c0_17 = arith.constant 0 : index
    %c0_18 = arith.constant 0 : index
    %24 = vector.load %arg5[%c0_16, %c0_17, %c0_18] : memref<1x9x16xi32, #tpu.memory_space<vmem>>, vector<1x1x16xi32>
    %25 = vector.shape_cast %24 : vector<1x1x16xi32> to vector<1x16xi32>
    %26 = vector.shape_cast %23 : vector<1x16xi32> to vector<1x1x16xi32>
    tpu.vector_store %arg5[%c0_16, %c0_17, %c0_18], %26 {strides = array<i32>} : memref<1x9x16xi32, #tpu.memory_space<vmem>>, vector<1x1x16xi32>,
    %27 = vector.broadcast %22 : vector<1x16xf32> to vector<16x16xf32>
    %28 = arith.cmpf oeq, %13, %27 : vector<16x16xf32>
    %cst_19 = arith.constant 0xFF800000 : f32
    %29 = vector.broadcast %cst_19 : f32 to vector<16x16xf32>
    %30 = arith.select %28, %29, %14 : vector<16x16xi1>, vector<16x16xf32>
    %c0_20 = arith.constant 0 : index
    %c0_21 = arith.constant 0 : index
    %31 = vector.load %arg6[%c0_20, %c0_21] : memref<16x16xf32, #tpu.memory_space<vmem>>, vector<16x16xf32>
    tpu.vector_store %arg6[%c0_20, %c0_21], %30 {strides = array<i32>} : memref<16x16xf32, #tpu.memory_space<vmem>>, vector<16x16xf32>,
    %c0_22 = arith.constant 0 : index
    %c0_23 = arith.constant 0 : index
    %32 = vector.load %arg6[%c0_22, %c0_23] : memref<16x16xf32, #tpu.memory_space<vmem>>, vector<16x16xf32>
    %cst_24 = arith.constant dense<0xFF800000> : vector<16xf32>
    %33 = vector.multi_reduction <maximumf>, %32, %cst_24 [0] : vector<16x16xf32> to vector<16xf32>
    %34 = vector.shape_cast %33 : vector<16xf32> to vector<1x16xf32>
    %35 = vector.broadcast %34 : vector<1x16xf32> to vector<16x16xf32>
    %36 = arith.cmpf oeq, %32, %35 : vector<16x16xf32>
    %cst_25 = arith.constant 1.600000e+01 : f32
    %37 = vector.broadcast %cst_25 : f32 to vector<16x16xf32>
    %38 = arith.select %36, %13, %37 : vector<16x16xi1>, vector<16x16xf32>
    %cst_26 = arith.constant dense<0x7F800000> : vector<16xf32>
    %39 = vector.multi_reduction <minimumf>, %38, %cst_26 [0] : vector<16x16xf32> to vector<16xf32>
    %40 = vector.shape_cast %39 : vector<16xf32> to vector<1x16xf32>
    %41 = arith.fptosi %40 : vector<1x16xf32> to vector<1x16xi32>
    %c0_27 = arith.constant 0 : index
    %c1 = arith.constant 1 : index
    %c0_28 = arith.constant 0 : index
    %42 = vector.load %arg5[%c0_27, %c1, %c0_28] : memref<1x9x16xi32, #tpu.memory_space<vmem>>, vector<1x1x16xi32>
    %43 = vector.shape_cast %42 : vector<1x1x16xi32> to vector<1x16xi32>
    %44 = vector.shape_cast %41 : vector<1x16xi32> to vector<1x1x16xi32>
    tpu.vector_store %arg5[%c0_27, %c1, %c0_28], %44 {strides = array<i32>} : memref<1x9x16xi32, #tpu.memory_space<vmem>>, vector<1x1x16xi32>,
    %45 = vector.broadcast %40 : vector<1x16xf32> to vector<16x16xf32>
    %46 = arith.cmpf oeq, %13, %45 : vector<16x16xf32>
    %cst_29 = arith.constant 0xFF800000 : f32
    %47 = vector.broadcast %cst_29 : f32 to vector<16x16xf32>
    %48 = arith.select %46, %47, %32 : vector<16x16xi1>, vector<16x16xf32>
    %c0_30 = arith.constant 0 : index
    %c0_31 = arith.constant 0 : index
    %49 = vector.load %arg6[%c0_30, %c0_31] : memref<16x16xf32, #tpu.memory_space<vmem>>, vector<16x16xf32>
    tpu.vector_store %arg6[%c0_30, %c0_31], %48 {strides = array<i32>} : memref<16x16xf32, #tpu.memory_space<vmem>>, vector<16x16xf32>,
    %c0_32 = arith.constant 0 : index
    %c0_33 = arith.constant 0 : index
    %50 = vector.load %arg6[%c0_32, %c0_33] : memref<16x16xf32, #tpu.memory_space<vmem>>, vector<16x16xf32>
    %cst_34 = arith.constant dense<0xFF800000> : vector<16xf32>
    %51 = vector.multi_reduction <maximumf>, %50, %cst_34 [0] : vector<16x16xf32> to vector<16xf32>
    %52 = vector.shape_cast %51 : vector<16xf32> to vector<1x16xf32>
    %53 = vector.broadcast %52 : vector<1x16xf32> to vector<16x16xf32>
    %54 = arith.cmpf oeq, %50, %53 : vector<16x16xf32>
    %cst_35 = arith.constant 1.600000e+01 : f32
    %55 = vector.broadcast %cst_35 : f32 to vector<16x16xf32>
    %56 = arith.select %54, %13, %55 : vector<16x16xi1>, vector<16x16xf32>
    %cst_36 = arith.constant dense<0x7F800000> : vector<16xf32>
    %57 = vector.multi_reduction <minimumf>, %56, %cst_36 [0] : vector<16x16xf32> to vector<16xf32>
    %58 = vector.shape_cast %57 : vector<16xf32> to vector<1x16xf32>
    %59 = arith.fptosi %58 : vector<1x16xf32> to vector<1x16xi32>
    %c0_37 = arith.constant 0 : index
    %c2 = arith.constant 2 : index
    %c0_38 = arith.constant 0 : index
    %60 = vector.load %arg5[%c0_37, %c2, %c0_38] : memref<1x9x16xi32, #tpu.memory_space<vmem>>, vector<1x1x16xi32>
    %61 = vector.shape_cast %60 : vector<1x1x16xi32> to vector<1x16xi32>
    %62 = vector.shape_cast %59 : vector<1x16xi32> to vector<1x1x16xi32>
    tpu.vector_store %arg5[%c0_37, %c2, %c0_38], %62 {strides = array<i32>} : memref<1x9x16xi32, #tpu.memory_space<vmem>>, vector<1x1x16xi32>,
    %63 = vector.broadcast %58 : vector<1x16xf32> to vector<16x16xf32>
    %64 = arith.cmpf oeq, %13, %63 : vector<16x16xf32>
    %cst_39 = arith.constant 0xFF800000 : f32
    %65 = vector.broadcast %cst_39 : f32 to vector<16x16xf32>
    %66 = arith.select %64, %65, %50 : vector<16x16xi1>, vector<16x16xf32>
    %c0_40 = arith.constant 0 : index
    %c0_41 = arith.constant 0 : index
    %67 = vector.load %arg6[%c0_40, %c0_41] : memref<16x16xf32, #tpu.memory_space<vmem>>, vector<16x16xf32>
    tpu.vector_store %arg6[%c0_40, %c0_41], %66 {strides = array<i32>} : memref<16x16xf32, #tpu.memory_space<vmem>>, vector<16x16xf32>,
    %c0_42 = arith.constant 0 : index
    %c0_43 = arith.constant 0 : index
    %68 = vector.load %arg6[%c0_42, %c0_43] : memref<16x16xf32, #tpu.memory_space<vmem>>, vector<16x16xf32>
    %cst_44 = arith.constant dense<0xFF800000> : vector<16xf32>
    %69 = vector.multi_reduction <maximumf>, %68, %cst_44 [0] : vector<16x16xf32> to vector<16xf32>
    %70 = vector.shape_cast %69 : vector<16xf32> to vector<1x16xf32>
    %71 = vector.broadcast %70 : vector<1x16xf32> to vector<16x16xf32>
    %72 = arith.cmpf oeq, %68, %71 : vector<16x16xf32>
    %cst_45 = arith.constant 1.600000e+01 : f32
    %73 = vector.broadcast %cst_45 : f32 to vector<16x16xf32>
    %74 = arith.select %72, %13, %73 : vector<16x16xi1>, vector<16x16xf32>
    %cst_46 = arith.constant dense<0x7F800000> : vector<16xf32>
    %75 = vector.multi_reduction <minimumf>, %74, %cst_46 [0] : vector<16x16xf32> to vector<16xf32>
    %76 = vector.shape_cast %75 : vector<16xf32> to vector<1x16xf32>
    %77 = arith.fptosi %76 : vector<1x16xf32> to vector<1x16xi32>
    %c0_47 = arith.constant 0 : index
    %c3 = arith.constant 3 : index
    %c0_48 = arith.constant 0 : index
    %78 = vector.load %arg5[%c0_47, %c3, %c0_48] : memref<1x9x16xi32, #tpu.memory_space<vmem>>, vector<1x1x16xi32>
    %79 = vector.shape_cast %78 : vector<1x1x16xi32> to vector<1x16xi32>
    %80 = vector.shape_cast %77 : vector<1x16xi32> to vector<1x1x16xi32>
    tpu.vector_store %arg5[%c0_47, %c3, %c0_48], %80 {strides = array<i32>} : memref<1x9x16xi32, #tpu.memory_space<vmem>>, vector<1x1x16xi32>,
    %81 = vector.broadcast %76 : vector<1x16xf32> to vector<16x16xf32>
    %82 = arith.cmpf oeq, %13, %81 : vector<16x16xf32>
    %cst_49 = arith.constant 0xFF800000 : f32
    %83 = vector.broadcast %cst_49 : f32 to vector<16x16xf32>
    %84 = arith.select %82, %83, %68 : vector<16x16xi1>, vector<16x16xf32>
    %c0_50 = arith.constant 0 : index
    %c0_51 = arith.constant 0 : index
    %85 = vector.load %arg6[%c0_50, %c0_51] : memref<16x16xf32, #tpu.memory_space<vmem>>, vector<16x16xf32>
    tpu.vector_store %arg6[%c0_50, %c0_51], %84 {strides = array<i32>} : memref<16x16xf32, #tpu.memory_space<vmem>>, vector<16x16xf32>,
    %c0_52 = arith.constant 0 : index
    %c0_53 = arith.constant 0 : index
    %86 = vector.load %arg6[%c0_52, %c0_53] : memref<16x16xf32, #tpu.memory_space<vmem>>, vector<16x16xf32>
    %cst_54 = arith.constant dense<0xFF800000> : vector<16xf32>
    %87 = vector.multi_reduction <maximumf>, %86, %cst_54 [0] : vector<16x16xf32> to vector<16xf32>
    %88 = vector.shape_cast %87 : vector<16xf32> to vector<1x16xf32>
    %89 = vector.broadcast %88 : vector<1x16xf32> to vector<16x16xf32>
    %90 = arith.cmpf oeq, %86, %89 : vector<16x16xf32>
    %cst_55 = arith.constant 1.600000e+01 : f32
    %91 = vector.broadcast %cst_55 : f32 to vector<16x16xf32>
    %92 = arith.select %90, %13, %91 : vector<16x16xi1>, vector<16x16xf32>
    %cst_56 = arith.constant dense<0x7F800000> : vector<16xf32>
    %93 = vector.multi_reduction <minimumf>, %92, %cst_56 [0] : vector<16x16xf32> to vector<16xf32>
    %94 = vector.shape_cast %93 : vector<16xf32> to vector<1x16xf32>
    %95 = arith.fptosi %94 : vector<1x16xf32> to vector<1x16xi32>
    %c0_57 = arith.constant 0 : index
    %c4 = arith.constant 4 : index
    %c0_58 = arith.constant 0 : index
    %96 = vector.load %arg5[%c0_57, %c4, %c0_58] : memref<1x9x16xi32, #tpu.memory_space<vmem>>, vector<1x1x16xi32>
    %97 = vector.shape_cast %96 : vector<1x1x16xi32> to vector<1x16xi32>
    %98 = vector.shape_cast %95 : vector<1x16xi32> to vector<1x1x16xi32>
    tpu.vector_store %arg5[%c0_57, %c4, %c0_58], %98 {strides = array<i32>} : memref<1x9x16xi32, #tpu.memory_space<vmem>>, vector<1x1x16xi32>,
    %99 = vector.broadcast %94 : vector<1x16xf32> to vector<16x16xf32>
    %100 = arith.cmpf oeq, %13, %99 : vector<16x16xf32>
    %cst_59 = arith.constant 0xFF800000 : f32
    %101 = vector.broadcast %cst_59 : f32 to vector<16x16xf32>
    %102 = arith.select %100, %101, %86 : vector<16x16xi1>, vector<16x16xf32>
    %c0_60 = arith.constant 0 : index
    %c0_61 = arith.constant 0 : index
    %103 = vector.load %arg6[%c0_60, %c0_61] : memref<16x16xf32, #tpu.memory_space<vmem>>, vector<16x16xf32>
    tpu.vector_store %arg6[%c0_60, %c0_61], %102 {strides = array<i32>} : memref<16x16xf32, #tpu.memory_space<vmem>>, vector<16x16xf32>,
    %c0_62 = arith.constant 0 : index
    %c0_63 = arith.constant 0 : index
    %104 = vector.load %arg6[%c0_62, %c0_63] : memref<16x16xf32, #tpu.memory_space<vmem>>, vector<16x16xf32>
    %cst_64 = arith.constant dense<0xFF800000> : vector<16xf32>
    %105 = vector.multi_reduction <maximumf>, %104, %cst_64 [0] : vector<16x16xf32> to vector<16xf32>
    %106 = vector.shape_cast %105 : vector<16xf32> to vector<1x16xf32>
    %107 = vector.broadcast %106 : vector<1x16xf32> to vector<16x16xf32>
    %108 = arith.cmpf oeq, %104, %107 : vector<16x16xf32>
    %cst_65 = arith.constant 1.600000e+01 : f32
    %109 = vector.broadcast %cst_65 : f32 to vector<16x16xf32>
    %110 = arith.select %108, %13, %109 : vector<16x16xi1>, vector<16x16xf32>
    %cst_66 = arith.constant dense<0x7F800000> : vector<16xf32>
    %111 = vector.multi_reduction <minimumf>, %110, %cst_66 [0] : vector<16x16xf32> to vector<16xf32>
    %112 = vector.shape_cast %111 : vector<16xf32> to vector<1x16xf32>
    %113 = arith.fptosi %112 : vector<1x16xf32> to vector<1x16xi32>
    %c0_67 = arith.constant 0 : index
    %c5 = arith.constant 5 : index
    %c0_68 = arith.constant 0 : index
    %114 = vector.load %arg5[%c0_67, %c5, %c0_68] : memref<1x9x16xi32, #tpu.memory_space<vmem>>, vector<1x1x16xi32>
    %115 = vector.shape_cast %114 : vector<1x1x16xi32> to vector<1x16xi32>
    %116 = vector.shape_cast %113 : vector<1x16xi32> to vector<1x1x16xi32>
    tpu.vector_store %arg5[%c0_67, %c5, %c0_68], %116 {strides = array<i32>} : memref<1x9x16xi32, #tpu.memory_space<vmem>>, vector<1x1x16xi32>,
    %117 = vector.broadcast %112 : vector<1x16xf32> to vector<16x16xf32>
    %118 = arith.cmpf oeq, %13, %117 : vector<16x16xf32>
    %cst_69 = arith.constant 0xFF800000 : f32
    %119 = vector.broadcast %cst_69 : f32 to vector<16x16xf32>
    %120 = arith.select %118, %119, %104 : vector<16x16xi1>, vector<16x16xf32>
    %c0_70 = arith.constant 0 : index
    %c0_71 = arith.constant 0 : index
    %121 = vector.load %arg6[%c0_70, %c0_71] : memref<16x16xf32, #tpu.memory_space<vmem>>, vector<16x16xf32>
    tpu.vector_store %arg6[%c0_70, %c0_71], %120 {strides = array<i32>} : memref<16x16xf32, #tpu.memory_space<vmem>>, vector<16x16xf32>,
    %c0_72 = arith.constant 0 : index
    %c0_73 = arith.constant 0 : index
    %122 = vector.load %arg6[%c0_72, %c0_73] : memref<16x16xf32, #tpu.memory_space<vmem>>, vector<16x16xf32>
    %cst_74 = arith.constant dense<0xFF800000> : vector<16xf32>
    %123 = vector.multi_reduction <maximumf>, %122, %cst_74 [0] : vector<16x16xf32> to vector<16xf32>
    %124 = vector.shape_cast %123 : vector<16xf32> to vector<1x16xf32>
    %125 = vector.broadcast %124 : vector<1x16xf32> to vector<16x16xf32>
    %126 = arith.cmpf oeq, %122, %125 : vector<16x16xf32>
    %cst_75 = arith.constant 1.600000e+01 : f32
    %127 = vector.broadcast %cst_75 : f32 to vector<16x16xf32>
    %128 = arith.select %126, %13, %127 : vector<16x16xi1>, vector<16x16xf32>
    %cst_76 = arith.constant dense<0x7F800000> : vector<16xf32>
    %129 = vector.multi_reduction <minimumf>, %128, %cst_76 [0] : vector<16x16xf32> to vector<16xf32>
    %130 = vector.shape_cast %129 : vector<16xf32> to vector<1x16xf32>
    %131 = arith.fptosi %130 : vector<1x16xf32> to vector<1x16xi32>
    %c0_77 = arith.constant 0 : index
    %c6 = arith.constant 6 : index
    %c0_78 = arith.constant 0 : index
    %132 = vector.load %arg5[%c0_77, %c6, %c0_78] : memref<1x9x16xi32, #tpu.memory_space<vmem>>, vector<1x1x16xi32>
    %133 = vector.shape_cast %132 : vector<1x1x16xi32> to vector<1x16xi32>
    %134 = vector.shape_cast %131 : vector<1x16xi32> to vector<1x1x16xi32>
    tpu.vector_store %arg5[%c0_77, %c6, %c0_78], %134 {strides = array<i32>} : memref<1x9x16xi32, #tpu.memory_space<vmem>>, vector<1x1x16xi32>,
    %135 = vector.broadcast %130 : vector<1x16xf32> to vector<16x16xf32>
    %136 = arith.cmpf oeq, %13, %135 : vector<16x16xf32>
    %cst_79 = arith.constant 0xFF800000 : f32
    %137 = vector.broadcast %cst_79 : f32 to vector<16x16xf32>
    %138 = arith.select %136, %137, %122 : vector<16x16xi1>, vector<16x16xf32>
    %c0_80 = arith.constant 0 : index
    %c0_81 = arith.constant 0 : index
    %139 = vector.load %arg6[%c0_80, %c0_81] : memref<16x16xf32, #tpu.memory_space<vmem>>, vector<16x16xf32>
    tpu.vector_store %arg6[%c0_80, %c0_81], %138 {strides = array<i32>} : memref<16x16xf32, #tpu.memory_space<vmem>>, vector<16x16xf32>,
    %c0_82 = arith.constant 0 : index
    %c0_83 = arith.constant 0 : index
    %140 = vector.load %arg6[%c0_82, %c0_83] : memref<16x16xf32, #tpu.memory_space<vmem>>, vector<16x16xf32>
    %cst_84 = arith.constant dense<0xFF800000> : vector<16xf32>
    %141 = vector.multi_reduction <maximumf>, %140, %cst_84 [0] : vector<16x16xf32> to vector<16xf32>
    %142 = vector.shape_cast %141 : vector<16xf32> to vector<1x16xf32>
    %143 = vector.broadcast %142 : vector<1x16xf32> to vector<16x16xf32>
    %144 = arith.cmpf oeq, %140, %143 : vector<16x16xf32>
    %cst_85 = arith.constant 1.600000e+01 : f32
    %145 = vector.broadcast %cst_85 : f32 to vector<16x16xf32>
    %146 = arith.select %144, %13, %145 : vector<16x16xi1>, vector<16x16xf32>
    %cst_86 = arith.constant dense<0x7F800000> : vector<16xf32>
    %147 = vector.multi_reduction <minimumf>, %146, %cst_86 [0] : vector<16x16xf32> to vector<16xf32>
    %148 = vector.shape_cast %147 : vector<16xf32> to vector<1x16xf32>
    %149 = arith.fptosi %148 : vector<1x16xf32> to vector<1x16xi32>
    %c0_87 = arith.constant 0 : index
    %c7 = arith.constant 7 : index
    %c0_88 = arith.constant 0 : index
    %150 = vector.load %arg5[%c0_87, %c7, %c0_88] : memref<1x9x16xi32, #tpu.memory_space<vmem>>, vector<1x1x16xi32>
    %151 = vector.shape_cast %150 : vector<1x1x16xi32> to vector<1x16xi32>
    %152 = vector.shape_cast %149 : vector<1x16xi32> to vector<1x1x16xi32>
    tpu.vector_store %arg5[%c0_87, %c7, %c0_88], %152 {strides = array<i32>} : memref<1x9x16xi32, #tpu.memory_space<vmem>>, vector<1x1x16xi32>,
    %153 = vector.broadcast %148 : vector<1x16xf32> to vector<16x16xf32>
    %154 = arith.cmpf oeq, %13, %153 : vector<16x16xf32>
    %cst_89 = arith.constant 0xFF800000 : f32
    %155 = vector.broadcast %cst_89 : f32 to vector<16x16xf32>
    %156 = arith.select %154, %155, %140 : vector<16x16xi1>, vector<16x16xf32>
    %c0_90 = arith.constant 0 : index
    %c0_91 = arith.constant 0 : index
    %157 = vector.load %arg6[%c0_90, %c0_91] : memref<16x16xf32, #tpu.memory_space<vmem>>, vector<16x16xf32>
    tpu.vector_store %arg6[%c0_90, %c0_91], %156 {strides = array<i32>} : memref<16x16xf32, #tpu.memory_space<vmem>>, vector<16x16xf32>,
    %c0_92 = arith.constant 0 : index
    %c0_93 = arith.constant 0 : index
    %158 = vector.load %arg6[%c0_92, %c0_93] : memref<16x16xf32, #tpu.memory_space<vmem>>, vector<16x16xf32>
    %cst_94 = arith.constant dense<0xFF800000> : vector<16xf32>
    %159 = vector.multi_reduction <maximumf>, %158, %cst_94 [0] : vector<16x16xf32> to vector<16xf32>
    %160 = vector.shape_cast %159 : vector<16xf32> to vector<1x16xf32>
    %161 = vector.broadcast %160 : vector<1x16xf32> to vector<16x16xf32>
    %162 = arith.cmpf oeq, %158, %161 : vector<16x16xf32>
    %cst_95 = arith.constant 1.600000e+01 : f32
    %163 = vector.broadcast %cst_95 : f32 to vector<16x16xf32>
    %164 = arith.select %162, %13, %163 : vector<16x16xi1>, vector<16x16xf32>
    %cst_96 = arith.constant dense<0x7F800000> : vector<16xf32>
    %165 = vector.multi_reduction <minimumf>, %164, %cst_96 [0] : vector<16x16xf32> to vector<16xf32>
    %166 = vector.shape_cast %165 : vector<16xf32> to vector<1x16xf32>
    %167 = arith.fptosi %166 : vector<1x16xf32> to vector<1x16xi32>
    %c0_97 = arith.constant 0 : index
    %c8 = arith.constant 8 : index
    %c0_98 = arith.constant 0 : index
    %168 = vector.load %arg5[%c0_97, %c8, %c0_98] : memref<1x9x16xi32, #tpu.memory_space<vmem>>, vector<1x1x16xi32>
    %169 = vector.shape_cast %168 : vector<1x1x16xi32> to vector<1x16xi32>
    %170 = vector.shape_cast %167 : vector<1x16xi32> to vector<1x1x16xi32>
    tpu.vector_store %arg5[%c0_97, %c8, %c0_98], %170 {strides = array<i32>} : memref<1x9x16xi32, #tpu.memory_space<vmem>>, vector<1x1x16xi32>,
    %171 = vector.broadcast %166 : vector<1x16xf32> to vector<16x16xf32>
    %172 = arith.cmpf oeq, %13, %171 : vector<16x16xf32>
    %cst_99 = arith.constant 0xFF800000 : f32
    %173 = vector.broadcast %cst_99 : f32 to vector<16x16xf32>
    %174 = arith.select %172, %173, %158 : vector<16x16xi1>, vector<16x16xf32>
    %c0_100 = arith.constant 0 : index
    %c0_101 = arith.constant 0 : index
    %175 = vector.load %arg6[%c0_100, %c0_101] : memref<16x16xf32, #tpu.memory_space<vmem>>, vector<16x16xf32>
    tpu.vector_store %arg6[%c0_100, %c0_101], %174 {strides = array<i32>} : memref<16x16xf32, #tpu.memory_space<vmem>>, vector<16x16xf32>,
    return
  }
  func.func @transform_0(%arg0: i32, %arg1: i32) -> (i32, i32, i32) {
    %c0_i32 = arith.constant 0 : i32
    %c0_i32_0 = arith.constant 0 : i32
    return %arg0, %c0_i32, %arg1 : i32, i32, i32
  }
  func.func @transform_1(%arg0: i32, %arg1: i32) -> (i32, i32, i32) {
    %c0_i32 = arith.constant 0 : i32
    %c0_i32_0 = arith.constant 0 : i32
    %c0_i32_1 = arith.constant 0 : i32
    return %arg0, %c0_i32, %c0_i32_0 : i32, i32, i32
  }
  func.func @transform_2(%arg0: i32, %arg1: i32) -> (i32, i32, i32) {
    %c0_i32 = arith.constant 0 : i32
    %c0_i32_0 = arith.constant 0 : i32
    %c0_i32_1 = arith.constant 0 : i32
    return %arg0, %c0_i32, %c0_i32_0 : i32, i32, i32
  }
  func.func @transform_3(%arg0: i32, %arg1: i32) -> (i32, i32, i32) {
    %c0_i32 = arith.constant 0 : i32
    %c0_i32_0 = arith.constant 0 : i32
    return %arg0, %c0_i32, %arg1 : i32, i32, i32
  }
}

</mosaic_0001>

<bundles_post_ra>
// kernel: tpu_custom_call.1
= control target key start
LH: loop header
LB: loop body
LE: loop exit
PB: predicated region body
PF: predicated region fallthrough
CT: control target
= control target key end

     0   :  { %s857_s12 = smov 0   ;;  %s859_s13 = smov 0   ;;  %s1017_s0 = inlined_call_operand.vmem [shape: f32[2,8,16], index: 0, kind: input, shape index: {}]   ;;  %s1018_s1 = inlined_call_operand.vmem [shape: f32[2,16,8], index: 1, kind: input, shape index: {}]   ;;  %s1019_s2 = inlined_call_operand.vmem [shape: f32[2,16,1], index: 2, kind: input, shape index: {}]   ;;  %s1020_s3 = inlined_call_operand.vmem [shape: s32[2,9,16], index: 3, kind: output, shape index: {}]  }
   0x1   :  { %s861_s14 = smov 0  }
   0x2 LB: > { %s25_s15 = sadd.s32 1, %s830_s13  ;;  %p745_p0 = scmp.ge.s32.totalorder %s834_s14, 1  ;;  %s834_s14 = sphi %s861_s14, %s13_s14   ;;  %s830_s13 = sphi %s859_s13, %s1022_s13   ;;  %s826_s12 = sphi %s857_s12, %s1021_s12  }
   0x3   : > { %p27_p1 = scmp.ge.s32.totalorder %s25_s15, 2  ;;  %p175_p2 = scmp.lt.s32.totalorder %s834_s14, 3 }
   0x5   : > { %s1024_s15 = smov (%p27_p1, %s25_s15), 0  ;;  %p176_p3 = pnand %p745_p0, %p175_p2 }
   0x6   : > { %p214_p4 = scmp.lt.s32.totalorder (!%p176_p3), %s826_s12, 1  ;;  %v836_v0 = vmov (!%p176_p3), 0   ;;  %vm244_vm0 = vcmask (!%p176_p3), 64512   ;;  %vm340_vm1 = vcmask (!%p176_p3), 130048   ;;  %v343_v17 = vlaneseq (!%p176_p3) }
   0x7   : > { %179 = sbr.rel (%p176_p3) target bundleno = 618 (0x26a), region = 32  ;;  %811 = vset.pattern.permute.xlu0 (!%p176_p3), %v836_v0  ;;  %vm373_vm6 = vcmask (!%p176_p3), 122880  }
   0x8   : > { %v344_v21 = vshrl.u32 (!%p176_p3), %v343_v17, 7 }
   0xa   : > { %v345_v24 = vadd.s32 (!%p176_p3), 8, %v344_v21  ;;  %v892_v27 = vcvt.s32.f32 (!%p176_p3), %v344_v21 }
   0xc   : > { %v894_v28 = vcvt.s32.f32 (!%p176_p3), %v345_v24 }
   0xe   : > { %s1026_s12 = smov (!%p214_p4, %s826_s12), 1 }
   0xf   : > { %s746_s16 = sshll.u32 %s1026_s12, 3  ;;  %s875_s17 = sshll.u32 %s1026_s12, 4 }
  0x10   : > { %s220_s20 = scalar_lea.vmem %s1017_s0, %s746_s16  ;;  %s225_s23 = scalar_lea.vmem %s1018_s1, %s875_s17 }
  0x11   : > { %v239_v1 = vld [vmem:[%s220_s20] sm:$0xff]  ;;  %v241_v3 = vld [vmem:[%s225_s23 + $0x8] sm:$0xff]  ;;  %s230_s26 = scalar_lea.vmem %s1019_s2, %s875_s17  ;;  %s906_s29 = scalar_lea.vmem %s1020_s3, %s875_s17 }
  0x12   : > { %v240_v2 = vld [vmem:[%s225_s23] sm:$0xff]  ;;  %763 = vmatprep.subr.mxu0 %v239_v1  ;;  %v243_v5 = vld [vmem:[%s230_s26 + $0x8] sm:$0xff] }
  0x13   : > { %765 = vmatprep.mubr.msk.f32.mxu0 %vm244_vm0, %v240_v2  ;;  %v242_v4 = vld [vmem:[%s230_s26] sm:$0xff]  ;;  %764 = vmatpush3.msra.mxu0 %v239_v1 }
  0x14   : > { %330 = vperm.xlu0 %811, %v242_v4   ;;  %766 = vmatmul.mubr.msk.f32.vlgmr.msra.gmra.mrb[0].mxu0 %vm244_vm0, %v241_v3 }
  0x18   : > { %335 = vperm.xlu0 %811, %v243_v5  }
  0x93   : > { %v331_v6 = vpop.permute.xlu0 %330 }
  0x97   : > { %v336_v10 = vpop.permute.xlu0 %335 }
  0xe7   : > { %v767_v7 = vpop.f32.mrb[0].mxu0 }
  0xe8   : > { %v327_v8 = vmul.f32 2.0, %v767_v7  ;;  %v317_v9 = vpop.f32.mrb[1].mxu0 }
  0xe9   : > { %v326_v11 = vmul.f32 2.0, %v317_v9 }
  0xea   : > { %v339_v12 = vsub.f32 %v327_v8, %v336_v10 }
  0xeb   : > { %v338_v13 = vsub.f32 %v326_v11, %v331_v6 }
  0xec   : > { %342 = vst.msk [vmem:[#allocation2 + $0x8] sm:$0xff] %vm340_vm1, %v339_v12 }
  0xed   : > { %341 = vst.msk [vmem:[#allocation2] sm:$0xff] %vm340_vm1, %v338_v13 }
  0xf3   : > { %v349_v14 = vld [vmem:[#allocation2 + $0x8] sm:$0xff] }
  0xf4   : > { %v348_v15 = vld [vmem:[#allocation2] sm:$0xff]  ;;  %v351_v16 = vsel %vm340_vm1, %v349_v14, -inf }
  0xf5   : > { %v350_v18 = vsel %vm340_vm1, %v348_v15, -inf }
  0xf6   : > { %v352_v19 = vmax.f32 %v350_v18, %v351_v16 }
  0xf8   : > { %v353_v20 = vrot.slane %v352_v19, 4 }
  0xfa   : > { %v354_v22 = vmax.f32 %v352_v19, %v353_v20 }
  0xfc   : > { %v355_v23 = vrot.slane %v354_v22, 2 }
  0xfe   : > { %v356_v25 = vmax.f32 %v354_v22, %v355_v23 }
 0x100   : > { %v357_v26 = vrot.slane %v356_v25, 1 }
 0x102   : > { %v358_v29 = vmax.f32 %v356_v25, %v357_v26 }
 0x104   : > { %vm359_vm2 = vcmp.eq.f32.partialorder %v348_v15, %v358_v29  ;;  %vm360_vm3 = vcmp.eq.f32.partialorder %v349_v14, %v358_v29 }
 0x105   : > { %v361_v30 = vsel %vm359_vm2, %v892_v27, 16.0  ;;  %v362_v31 = vsel %vm360_vm3, %v894_v28, 16.0 }
 0x106   : > { %v363_v32 = vsel %vm340_vm1, %v361_v30, inf  ;;  %v364_v33 = vsel %vm340_vm1, %v362_v31, inf }
 0x107   : > { %v365_v34 = vmin.f32 %v363_v32, %v364_v33 }
 0x109   : > { %v366_v35 = vrot.slane %v365_v34, 4 }
 0x10b   : > { %v367_v36 = vmin.f32 %v365_v34, %v366_v35 }
 0x10d   : > { %v368_v37 = vrot.slane %v367_v36, 2 }
 0x10f   : > { %v369_v38 = vmin.f32 %v367_v36, %v368_v37 }
 0x111   : > { %v370_v39 = vrot.slane %v369_v38, 1 }
 0x113   : > { %v371_v40 = vmin.f32 %v369_v38, %v370_v39 }
 0x115   : > { %v768_v41 = vtrunc.f32 %v371_v40  ;;  %vm375_vm4 = vcmp.eq.f32.partialorder %v892_v27, %v371_v40  ;;  %vm376_vm5 = vcmp.eq.f32.partialorder %v894_v28, %v371_v40 }
 0x116   : > { %v377_v42 = vsel %vm375_vm4, -inf, %v348_v15  ;;  %v378_v43 = vsel %vm376_vm5, -inf, %v349_v14 }
 0x117   : > { %v769_v44 = vcvt.f32.s32 %v768_v41  ;;  %379 = vst.msk [vmem:[#allocation2] sm:$0xff] %vm340_vm1, %v377_v42  ;;  %380 = vst.msk [vmem:[#allocation2 + $0x8] sm:$0xff] %vm340_vm1, %v378_v43 }
 0x119   : > { %374 = vst.msk [vmem:[%s906_s29] sm:$0x1] %vm373_vm6, %v769_v44 }
 0x11e   : > { %v381_v45 = vld [vmem:[#allocation2] sm:$0xff]  ;;  %v382_v46 = vld [vmem:[#allocation2 + $0x8] sm:$0xff] }
 0x11f   : > { %v383_v47 = vsel %vm340_vm1, %v381_v45, -inf  ;;  %v384_v48 = vsel %vm340_vm1, %v382_v46, -inf }
 0x120   : > { %v385_v49 = vmax.f32 %v383_v47, %v384_v48 }
 0x122   : > { %v386_v50 = vrot.slane %v385_v49, 4 }
 0x124   : > { %v387_v51 = vmax.f32 %v385_v49, %v386_v50 }
 0x126   : > { %v388_v52 = vrot.slane %v387_v51, 2 }
 0x128   : > { %v389_v53 = vmax.f32 %v387_v51, %v388_v52 }
 0x12a   : > { %v390_v54 = vrot.slane %v389_v53, 1 }
 0x12c   : > { %v391_v55 = vmax.f32 %v389_v53, %v390_v54 }
 0x12e   : > { %vm392_vm7 = vcmp.eq.f32.partialorder %v381_v45, %v391_v55  ;;  %vm393_vm8 = vcmp.eq.f32.partialorder %v382_v46, %v391_v55 }
 0x12f   : > { %v394_v56 = vsel %vm392_vm7, %v892_v27, 16.0  ;;  %v395_v57 = vsel %vm393_vm8, %v894_v28, 16.0 }
 0x130   : > { %v396_v58 = vsel %vm340_vm1, %v394_v56, inf  ;;  %v397_v59 = vsel %vm340_vm1, %v395_v57, inf }
 0x131   : > { %v398_v60 = vmin.f32 %v396_v58, %v397_v59 }
 0x133   : > { %v399_v61 = vrot.slane %v398_v60, 4 }
 0x135   : > { %v400_v62 = vmin.f32 %v398_v60, %v399_v61 }
 0x137   : > { %v401_v63 = vrot.slane %v400_v62, 2 }
 0x139   : > { %v402_v0 = vmin.f32 %v400_v62, %v401_v63 }
 0x13b   : > { %v403_v1 = vrot.slane %v402_v0, 1 }
 0x13d   : > { %v404_v2 = vmin.f32 %v402_v0, %v403_v1 }
 0x13f   : > { %v770_v3 = vtrunc.f32 %v404_v2  ;;  %vm407_vm9 = vcmp.eq.f32.partialorder %v892_v27, %v404_v2  ;;  %vm408_vm10 = vcmp.eq.f32.partialorder %v894_v28, %v404_v2 }
 0x140   : > { %v409_v4 = vsel %vm407_vm9, -inf, %v381_v45  ;;  %v410_v5 = vsel %vm408_vm10, -inf, %v382_v46 }
 0x141   : > { %v771_v6 = vcvt.f32.s32 %v770_v3  ;;  %411 = vst.msk [vmem:[#allocation2] sm:$0xff] %vm340_vm1, %v409_v4  ;;  %412 = vst.msk [vmem:[#allocation2 + $0x8] sm:$0xff] %vm340_vm1, %v410_v5 }
 0x143   : > { %406 = vst.msk [vmem:[%s906_s29 + $0x1] sm:$0x1] %vm373_vm6, %v771_v6 }
 0x148   : > { %v413_v7 = vld [vmem:[#allocation2] sm:$0xff]  ;;  %v414_v8 = vld [vmem:[#allocation2 + $0x8] sm:$0xff] }
 0x149   : > { %v415_v9 = vsel %vm340_vm1, %v413_v7, -inf  ;;  %v416_v10 = vsel %vm340_vm1, %v414_v8, -inf }
 0x14a   : > { %v417_v11 = vmax.f32 %v415_v9, %v416_v10 }
 0x14c   : > { %v418_v12 = vrot.slane %v417_v11, 4 }
 0x14e   : > { %v419_v13 = vmax.f32 %v417_v11, %v418_v12 }
 0x150   : > { %v420_v14 = vrot.slane %v419_v13, 2 }
 0x152   : > { %v421_v15 = vmax.f32 %v419_v13, %v420_v14 }
 0x154   : > { %v422_v16 = vrot.slane %v421_v15, 1 }
 0x156   : > { %v423_v17 = vmax.f32 %v421_v15, %v422_v16 }
 0x158   : > { %vm424_vm11 = vcmp.eq.f32.partialorder %v413_v7, %v423_v17  ;;  %vm425_vm12 = vcmp.eq.f32.partialorder %v414_v8, %v423_v17 }
 0x159   : > { %v426_v18 = vsel %vm424_vm11, %v892_v27, 16.0  ;;  %v427_v19 = vsel %vm425_vm12, %v894_v28, 16.0 }
 0x15a   : > { %v428_v20 = vsel %vm340_vm1, %v426_v18, inf  ;;  %v429_v21 = vsel %vm340_vm1, %v427_v19, inf }
 0x15b   : > { %v430_v22 = vmin.f32 %v428_v20, %v429_v21 }
 0x15d   : > { %v431_v23 = vrot.slane %v430_v22, 4 }
 0x15f   : > { %v432_v24 = vmin.f32 %v430_v22, %v431_v23 }
 0x161   : > { %v433_v25 = vrot.slane %v432_v24, 2 }
 0x163   : > { %v434_v26 = vmin.f32 %v432_v24, %v433_v25 }
 0x165   : > { %v435_v29 = vrot.slane %v434_v26, 1 }
 0x167   : > { %v436_v30 = vmin.f32 %v434_v26, %v435_v29 }
 0x169   : > { %v772_v31 = vtrunc.f32 %v436_v30  ;;  %vm439_vm13 = vcmp.eq.f32.partialorder %v892_v27, %v436_v30  ;;  %vm440_vm14 = vcmp.eq.f32.partialorder %v894_v28, %v436_v30 }
 0x16a   : > { %v441_v32 = vsel %vm439_vm13, -inf, %v413_v7  ;;  %v442_v33 = vsel %vm440_vm14, -inf, %v414_v8 }
 0x16b   : > { %v773_v34 = vcvt.f32.s32 %v772_v31  ;;  %443 = vst.msk [vmem:[#allocation2] sm:$0xff] %vm340_vm1, %v441_v32  ;;  %444 = vst.msk [vmem:[#allocation2 + $0x8] sm:$0xff] %vm340_vm1, %v442_v33 }
 0x16d   : > { %438 = vst.msk [vmem:[%s906_s29 + $0x2] sm:$0x1] %vm373_vm6, %v773_v34 }
 0x172   : > { %v445_v35 = vld [vmem:[#allocation2] sm:$0xff]  ;;  %v446_v36 = vld [vmem:[#allocation2 + $0x8] sm:$0xff] }
 0x173   : > { %v447_v37 = vsel %vm340_vm1, %v445_v35, -inf  ;;  %v448_v38 = vsel %vm340_vm1, %v446_v36, -inf }
 0x174   : > { %v449_v39 = vmax.f32 %v447_v37, %v448_v38 }
 0x176   : > { %v450_v40 = vrot.slane %v449_v39, 4 }
 0x178   : > { %v451_v41 = vmax.f32 %v449_v39, %v450_v40 }
 0x17a   : > { %v452_v42 = vrot.slane %v451_v41, 2 }
 0x17c   : > { %v453_v43 = vmax.f32 %v451_v41, %v452_v42 }
 0x17e   : > { %v454_v44 = vrot.slane %v453_v43, 1 }
 0x180   : > { %v455_v45 = vmax.f32 %v453_v43, %v454_v44 }
 0x182   : > { %vm456_vm15 = vcmp.eq.f32.partialorder %v445_v35, %v455_v45  ;;  %vm457_vm0 = vcmp.eq.f32.partialorder %v446_v36, %v455_v45 }
 0x183   : > { %v458_v46 = vsel %vm456_vm15, %v892_v27, 16.0  ;;  %v459_v47 = vsel %vm457_vm0, %v894_v28, 16.0 }
 0x184   : > { %v460_v48 = vsel %vm340_vm1, %v458_v46, inf  ;;  %v461_v49 = vsel %vm340_vm1, %v459_v47, inf }
 0x185   : > { %v462_v50 = vmin.f32 %v460_v48, %v461_v49 }
 0x187   : > { %v463_v51 = vrot.slane %v462_v50, 4 }
 0x189   : > { %v464_v52 = vmin.f32 %v462_v50, %v463_v51 }
 0x18b   : > { %v465_v53 = vrot.slane %v464_v52, 2 }
 0x18d   : > { %v466_v54 = vmin.f32 %v464_v52, %v465_v53 }
 0x18f   : > { %v467_v55 = vrot.slane %v466_v54, 1 }
 0x191   : > { %v468_v56 = vmin.f32 %v466_v54, %v467_v55 }
 0x193   : > { %v774_v57 = vtrunc.f32 %v468_v56  ;;  %vm471_vm2 = vcmp.eq.f32.partialorder %v892_v27, %v468_v56  ;;  %vm472_vm3 = vcmp.eq.f32.partialorder %v894_v28, %v468_v56 }
 0x194   : > { %v473_v58 = vsel %vm471_vm2, -inf, %v445_v35  ;;  %v474_v59 = vsel %vm472_vm3, -inf, %v446_v36 }
 0x195   : > { %v775_v60 = vcvt.f32.s32 %v774_v57  ;;  %475 = vst.msk [vmem:[#allocation2] sm:$0xff] %vm340_vm1, %v473_v58  ;;  %476 = vst.msk [vmem:[#allocation2 + $0x8] sm:$0xff] %vm340_vm1, %v474_v59 }
 0x197   : > { %470 = vst.msk [vmem:[%s906_s29 + $0x3] sm:$0x1] %vm373_vm6, %v775_v60 }
 0x19c   : > { %v477_v61 = vld [vmem:[#allocation2] sm:$0xff]  ;;  %v478_v62 = vld [vmem:[#allocation2 + $0x8] sm:$0xff] }
 0x19d   : > { %v479_v63 = vsel %vm340_vm1, %v477_v61, -inf  ;;  %v480_v0 = vsel %vm340_vm1, %v478_v62, -inf }
 0x19e   : > { %v481_v1 = vmax.f32 %v479_v63, %v480_v0 }
 0x1a0   : > { %v482_v2 = vrot.slane %v481_v1, 4 }
 0x1a2   : > { %v483_v3 = vmax.f32 %v481_v1, %v482_v2 }
 0x1a4   : > { %v484_v4 = vrot.slane %v483_v3, 2 }
 0x1a6   : > { %v485_v5 = vmax.f32 %v483_v3, %v484_v4 }
 0x1a8   : > { %v486_v6 = vrot.slane %v485_v5, 1 }
 0x1aa   : > { %v487_v7 = vmax.f32 %v485_v5, %v486_v6 }
 0x1ac   : > { %vm488_vm4 = vcmp.eq.f32.partialorder %v477_v61, %v487_v7  ;;  %vm489_vm5 = vcmp.eq.f32.partialorder %v478_v62, %v487_v7 }
 0x1ad   : > { %v490_v8 = vsel %vm488_vm4, %v892_v27, 16.0  ;;  %v491_v9 = vsel %vm489_vm5, %v894_v28, 16.0 }
 0x1ae   : > { %v492_v10 = vsel %vm340_vm1, %v490_v8, inf  ;;  %v493_v11 = vsel %vm340_vm1, %v491_v9, inf }
 0x1af   : > { %v494_v12 = vmin.f32 %v492_v10, %v493_v11 }
 0x1b1   : > { %v495_v13 = vrot.slane %v494_v12, 4 }
 0x1b3   : > { %v496_v14 = vmin.f32 %v494_v12, %v495_v13 }
 0x1b5   : > { %v497_v15 = vrot.slane %v496_v14, 2 }
 0x1b7   : > { %v498_v16 = vmin.f32 %v496_v14, %v497_v15 }
 0x1b9   : > { %v499_v17 = vrot.slane %v498_v16, 1 }
 0x1bb   : > { %v500_v18 = vmin.f32 %v498_v16, %v499_v17 }
 0x1bd   : > { %v776_v19 = vtrunc.f32 %v500_v18  ;;  %vm503_vm7 = vcmp.eq.f32.partialorder %v892_v27, %v500_v18  ;;  %vm504_vm8 = vcmp.eq.f32.partialorder %v894_v28, %v500_v18 }
 0x1be   : > { %v505_v20 = vsel %vm503_vm7, -inf, %v477_v61  ;;  %v506_v21 = vsel %vm504_vm8, -inf, %v478_v62 }
 0x1bf   : > { %v777_v22 = vcvt.f32.s32 %v776_v19  ;;  %507 = vst.msk [vmem:[#allocation2] sm:$0xff] %vm340_vm1, %v505_v20  ;;  %508 = vst.msk [vmem:[#allocation2 + $0x8] sm:$0xff] %vm340_vm1, %v506_v21 }
 0x1c1   : > { %502 = vst.msk [vmem:[%s906_s29 + $0x4] sm:$0x1] %vm373_vm6, %v777_v22 }
 0x1c6   : > { %v509_v23 = vld [vmem:[#allocation2] sm:$0xff]  ;;  %v510_v24 = vld [vmem:[#allocation2 + $0x8] sm:$0xff] }
 0x1c7   : > { %v511_v25 = vsel %vm340_vm1, %v509_v23, -inf  ;;  %v512_v26 = vsel %vm340_vm1, %v510_v24, -inf }
 0x1c8   : > { %v513_v29 = vmax.f32 %v511_v25, %v512_v26 }
 0x1ca   : > { %v514_v30 = vrot.slane %v513_v29, 4 }
 0x1cc   : > { %v515_v31 = vmax.f32 %v513_v29, %v514_v30 }
 0x1ce   : > { %v516_v32 = vrot.slane %v515_v31, 2 }
 0x1d0   : > { %v517_v33 = vmax.f32 %v515_v31, %v516_v32 }
 0x1d2   : > { %v518_v34 = vrot.slane %v517_v33, 1 }
 0x1d4   : > { %v519_v35 = vmax.f32 %v517_v33, %v518_v34 }
 0x1d6   : > { %vm520_vm9 = vcmp.eq.f32.partialorder %v509_v23, %v519_v35  ;;  %vm521_vm10 = vcmp.eq.f32.partialorder %v510_v24, %v519_v35 }
 0x1d7   : > { %v522_v36 = vsel %vm520_vm9, %v892_v27, 16.0  ;;  %v523_v37 = vsel %vm521_vm10, %v894_v28, 16.0 }
 0x1d8   : > { %v524_v38 = vsel %vm340_vm1, %v522_v36, inf  ;;  %v525_v39 = vsel %vm340_vm1, %v523_v37, inf }
 0x1d9   : > { %v526_v40 = vmin.f32 %v524_v38, %v525_v39 }
 0x1db   : > { %v527_v41 = vrot.slane %v526_v40, 4 }
 0x1dd   : > { %v528_v42 = vmin.f32 %v526_v40, %v527_v41 }
 0x1df   : > { %v529_v43 = vrot.slane %v528_v42, 2 }
 0x1e1   : > { %v530_v44 = vmin.f32 %v528_v42, %v529_v43 }
 0x1e3   : > { %v531_v45 = vrot.slane %v530_v44, 1 }
 0x1e5   : > { %v532_v46 = vmin.f32 %v530_v44, %v531_v45 }
 0x1e7   : > { %v778_v47 = vtrunc.f32 %v532_v46  ;;  %vm535_vm11 = vcmp.eq.f32.partialorder %v892_v27, %v532_v46  ;;  %vm536_vm12 = vcmp.eq.f32.partialorder %v894_v28, %v532_v46 }
 0x1e8   : > { %v537_v48 = vsel %vm535_vm11, -inf, %v509_v23  ;;  %v538_v49 = vsel %vm536_vm12, -inf, %v510_v24 }
 0x1e9   : > { %v779_v50 = vcvt.f32.s32 %v778_v47  ;;  %539 = vst.msk [vmem:[#allocation2] sm:$0xff] %vm340_vm1, %v537_v48  ;;  %540 = vst.msk [vmem:[#allocation2 + $0x8] sm:$0xff] %vm340_vm1, %v538_v49 }
 0x1eb   : > { %534 = vst.msk [vmem:[%s906_s29 + $0x5] sm:$0x1] %vm373_vm6, %v779_v50 }
 0x1f0   : > { %v541_v51 = vld [vmem:[#allocation2] sm:$0xff]  ;;  %v542_v52 = vld [vmem:[#allocation2 + $0x8] sm:$0xff] }
 0x1f1   : > { %v543_v53 = vsel %vm340_vm1, %v541_v51, -inf  ;;  %v544_v54 = vsel %vm340_vm1, %v542_v52, -inf }
 0x1f2   : > { %v545_v55 = vmax.f32 %v543_v53, %v544_v54 }
 0x1f4   : > { %v546_v56 = vrot.slane %v545_v55, 4 }
 0x1f6   : > { %v547_v57 = vmax.f32 %v545_v55, %v546_v56 }
 0x1f8   : > { %v548_v58 = vrot.slane %v547_v57, 2 }
 0x1fa   : > { %v549_v59 = vmax.f32 %v547_v57, %v548_v58 }
 0x1fc   : > { %v550_v60 = vrot.slane %v549_v59, 1 }
 0x1fe   : > { %v551_v61 = vmax.f32 %v549_v59, %v550_v60 }
 0x200   : > { %vm552_vm13 = vcmp.eq.f32.partialorder %v541_v51, %v551_v61  ;;  %vm553_vm14 = vcmp.eq.f32.partialorder %v542_v52, %v551_v61 }
 0x201   : > { %v554_v62 = vsel %vm552_vm13, %v892_v27, 16.0  ;;  %v555_v63 = vsel %vm553_vm14, %v894_v28, 16.0 }
 0x202   : > { %v556_v0 = vsel %vm340_vm1, %v554_v62, inf  ;;  %v557_v1 = vsel %vm340_vm1, %v555_v63, inf }
 0x203   : > { %v558_v2 = vmin.f32 %v556_v0, %v557_v1 }
 0x205   : > { %v559_v3 = vrot.slane %v558_v2, 4 }
 0x207   : > { %v560_v4 = vmin.f32 %v558_v2, %v559_v3 }
 0x209   : > { %v561_v5 = vrot.slane %v560_v4, 2 }
 0x20b   : > { %v562_v6 = vmin.f32 %v560_v4, %v561_v5 }
 0x20d   : > { %v563_v7 = vrot.slane %v562_v6, 1 }
 0x20f   : > { %v564_v8 = vmin.f32 %v562_v6, %v563_v7 }
 0x211   : > { %v780_v9 = vtrunc.f32 %v564_v8  ;;  %vm567_vm15 = vcmp.eq.f32.partialorder %v892_v27, %v564_v8  ;;  %vm568_vm0 = vcmp.eq.f32.partialorder %v894_v28, %v564_v8 }
 0x212   : > { %v569_v10 = vsel %vm567_vm15, -inf, %v541_v51  ;;  %v570_v11 = vsel %vm568_vm0, -inf, %v542_v52 }
 0x213   : > { %v781_v12 = vcvt.f32.s32 %v780_v9  ;;  %571 = vst.msk [vmem:[#allocation2] sm:$0xff] %vm340_vm1, %v569_v10  ;;  %572 = vst.msk [vmem:[#allocation2 + $0x8] sm:$0xff] %vm340_vm1, %v570_v11 }
 0x215   : > { %566 = vst.msk [vmem:[%s906_s29 + $0x6] sm:$0x1] %vm373_vm6, %v781_v12 }
 0x21a   : > { %v573_v13 = vld [vmem:[#allocation2] sm:$0xff]  ;;  %v574_v14 = vld [vmem:[#allocation2 + $0x8] sm:$0xff] }
 0x21b   : > { %v575_v15 = vsel %vm340_vm1, %v573_v13, -inf  ;;  %v576_v16 = vsel %vm340_vm1, %v574_v14, -inf }
 0x21c   : > { %v577_v17 = vmax.f32 %v575_v15, %v576_v16 }
 0x21e   : > { %v578_v18 = vrot.slane %v577_v17, 4 }
 0x220   : > { %v579_v19 = vmax.f32 %v577_v17, %v578_v18 }
 0x222   : > { %v580_v20 = vrot.slane %v579_v19, 2 }
 0x224   : > { %v581_v21 = vmax.f32 %v579_v19, %v580_v20 }
 0x226   : > { %v582_v22 = vrot.slane %v581_v21, 1 }
 0x228   : > { %v583_v23 = vmax.f32 %v581_v21, %v582_v22 }
 0x22a   : > { %vm584_vm2 = vcmp.eq.f32.partialorder %v573_v13, %v583_v23  ;;  %vm585_vm3 = vcmp.eq.f32.partialorder %v574_v14, %v583_v23 }
 0x22b   : > { %v586_v24 = vsel %vm584_vm2, %v892_v27, 16.0  ;;  %v587_v25 = vsel %vm585_vm3, %v894_v28, 16.0 }
 0x22c   : > { %v588_v26 = vsel %vm340_vm1, %v586_v24, inf  ;;  %v589_v29 = vsel %vm340_vm1, %v587_v25, inf }
 0x22d   : > { %v590_v30 = vmin.f32 %v588_v26, %v589_v29 }
 0x22f   : > { %v591_v31 = vrot.slane %v590_v30, 4 }
 0x231   : > { %v592_v32 = vmin.f32 %v590_v30, %v591_v31 }
 0x233   : > { %v593_v33 = vrot.slane %v592_v32, 2 }
 0x235   : > { %v594_v34 = vmin.f32 %v592_v32, %v593_v33 }
 0x237   : > { %v595_v35 = vrot.slane %v594_v34, 1 }
 0x239   : > { %v596_v36 = vmin.f32 %v594_v34, %v595_v35 }
 0x23b   : > { %v782_v37 = vtrunc.f32 %v596_v36  ;;  %vm599_vm4 = vcmp.eq.f32.partialorder %v892_v27, %v596_v36  ;;  %vm600_vm5 = vcmp.eq.f32.partialorder %v894_v28, %v596_v36 }
 0x23c   : > { %v601_v38 = vsel %vm599_vm4, -inf, %v573_v13  ;;  %v602_v39 = vsel %vm600_vm5, -inf, %v574_v14 }
 0x23d   : > { %v783_v40 = vcvt.f32.s32 %v782_v37  ;;  %603 = vst.msk [vmem:[#allocation2] sm:$0xff] %vm340_vm1, %v601_v38  ;;  %604 = vst.msk [vmem:[#allocation2 + $0x8] sm:$0xff] %vm340_vm1, %v602_v39 }
 0x23f   : > { %598 = vst.msk [vmem:[%s906_s29 + $0x7] sm:$0x1] %vm373_vm6, %v783_v40 }
 0x244   : > { %v605_v41 = vld [vmem:[#allocation2] sm:$0xff]  ;;  %v606_v42 = vld [vmem:[#allocation2 + $0x8] sm:$0xff] }
 0x245   : > { %v607_v43 = vsel %vm340_vm1, %v605_v41, -inf  ;;  %v608_v44 = vsel %vm340_vm1, %v606_v42, -inf }
 0x246   : > { %v609_v45 = vmax.f32 %v607_v43, %v608_v44 }
 0x248   : > { %v610_v46 = vrot.slane %v609_v45, 4 }
 0x24a   : > { %v611_v47 = vmax.f32 %v609_v45, %v610_v46 }
 0x24c   : > { %v612_v48 = vrot.slane %v611_v47, 2 }
 0x24e   : > { %v613_v49 = vmax.f32 %v611_v47, %v612_v48 }
 0x250   : > { %v614_v50 = vrot.slane %v613_v49, 1 }
 0x252   : > { %v615_v51 = vmax.f32 %v613_v49, %v614_v50 }
 0x254   : > { %vm616_vm7 = vcmp.eq.f32.partialorder %v605_v41, %v615_v51  ;;  %vm617_vm8 = vcmp.eq.f32.partialorder %v606_v42, %v615_v51 }
 0x255   : > { %v618_v52 = vsel %vm616_vm7, %v892_v27, 16.0  ;;  %v619_v53 = vsel %vm617_vm8, %v894_v28, 16.0 }
 0x256   : > { %v620_v54 = vsel %vm340_vm1, %v618_v52, inf  ;;  %v621_v55 = vsel %vm340_vm1, %v619_v53, inf }
 0x257   : > { %v622_v56 = vmin.f32 %v620_v54, %v621_v55 }
 0x259   : > { %v623_v57 = vrot.slane %v622_v56, 4 }
 0x25b   : > { %v624_v58 = vmin.f32 %v622_v56, %v623_v57 }
 0x25d   : > { %v625_v59 = vrot.slane %v624_v58, 2 }
 0x25f   : > { %v626_v60 = vmin.f32 %v624_v58, %v625_v59 }
 0x261   : > { %v627_v61 = vrot.slane %v626_v60, 1 }
 0x263   : > { %v628_v62 = vmin.f32 %v626_v60, %v627_v61 }
 0x265   : > { %v784_v63 = vtrunc.f32 %v628_v62  ;;  %vm631_vm9 = vcmp.eq.f32.partialorder %v892_v27, %v628_v62  ;;  %vm632_vm10 = vcmp.eq.f32.partialorder %v894_v28, %v628_v62 }
 0x266   : > { %v633_v0 = vsel %vm631_vm9, -inf, %v605_v41  ;;  %v634_v1 = vsel %vm632_vm10, -inf, %v606_v42 }
 0x267   : > { %v785_v2 = vcvt.f32.s32 %v784_v63  ;;  %635 = vst.msk [vmem:[#allocation2] sm:$0xff] %vm340_vm1, %v633_v0  ;;  %636 = vst.msk [vmem:[#allocation2 + $0x8] sm:$0xff] %vm340_vm1, %v634_v1 }
 0x269   : > { %630 = vst.msk [vmem:[%s906_s29 + $0x8] sm:$0x1] %vm373_vm6, %v785_v2 }
 0x26a PF: > { %s13_s14 = sadd.s32 1, %s834_s14   ;;  %s1021_s12 = smov %s830_s13 }
 0x26b   : > { %p10_p5 = scmp.ge.s32.totalorder %s13_s14, 4   ;;  %s1022_s13 = smov %s1024_s15 }
 0x26d   :  { %12 = sbr.rel (!%p10_p5) target bundleno = 2 (0x2), region = 68 }

</bundles_post_ra>
